<compile_context>
chip_gen: v5e
topology: v5e:2x2
jax: 0.10.0
libtpu: 0.0.40
codegen_flags: <defaults>
</compile_context>

<pallas_src>
import jax
import jax.numpy as jnp
from jax.experimental import pallas as pl
from jax.experimental.pallas import tpu as pltpu


# ---------------------------------------------------------------------------
# Tiling helpers
# ---------------------------------------------------------------------------
def _pick_batch_tile(batch, streamed_bytes_per_row,
                     vmem_budget_bytes=16 * 1024 * 1024):
    """Pick the batch tile (sublane axis of every activation block).

    * power of two, multiple of 8 sublanes, capped at 512;
    * capped so double-buffered streamed activation blocks fit the VMEM
      budget (safe under v5e's 16 MiB scoped default, v7x's 64 MiB physical);
    * capped at ~batch/4 so the grid has >=4 steps for DMA/compute overlap
      (and >=2 steps so "parallel" can shard across v7x's two TensorCores)
      whenever the batch is large enough to care.
    Ragged batches are padded by the caller instead of shrinking the tile.
    """
    vmem_cap = vmem_budget_bytes // max(1, 2 * streamed_bytes_per_row)
    limit = min(512, max(8, vmem_cap), max(8, batch // 4))
    tile = 8
    while tile * 2 <= limit:
        tile *= 2
    return tile


def _pad_batch(arr, padded_batch):
    pad = padded_batch - arr.shape[0]
    if pad == 0:
        return arr
    return jnp.pad(arr, ((0, pad), (0, 0)))


def _compiler_params():
    return pltpu.CompilerParams(
        dimension_semantics=("parallel",),       # batch tiles are independent
        vmem_limit_bytes=32 * 1024 * 1024)       # above v5e's 16 MiB scoped default


_BATCHED = lambda i: (i, 0)      # activations / output: tiled over batch
_FULL = lambda i: (0, 0)         # parameters: same (resident) block each step


# ---------------------------------------------------------------------------
# Default kernel: dead projection math removed (output-equivalent, roofline)
# ---------------------------------------------------------------------------
def _context_rowsum_kernel(x_ref, ctx_ref):
    # softmax over the size-1 energy axis is identically 1.0, so
    # context == sum(x_t, axis=1, keepdims=True).  Pure lane reduce; the
    # kernel is HBM-read bound on streaming x_t.
    x = x_ref[...].astype(jnp.float32)                       # (tb, F)
    ctx_ref[...] = jnp.sum(x, axis=-1, keepdims=True).astype(ctx_ref.dtype)


def attention_forward(x_t, h_prev, Wq, bq, Wk, bk, V, bv):
    """Drop-in forward of the PyTorch `Attention` module (same signature).

    h_prev and all weights are mathematically dead w.r.t. the output (softmax
    over a size-1 axis == 1), so only x_t is streamed through the kernel.
    """
    del h_prev, Wq, bq, Wk, bk, V, bv   # dead w.r.t. the output -- see header
    B, F_in = x_t.shape
    elem_bytes = jnp.dtype(x_t.dtype).itemsize
    tb = _pick_batch_tile(B, F_in * elem_bytes)
    padded_B = -(-B // tb) * tb
    x_p = _pad_batch(x_t, padded_B)

    ctx = pl.pallas_call(
        _context_rowsum_kernel,
        out_shape=jax.ShapeDtypeStruct((padded_B, 1), jnp.float32),
        grid=(padded_B // tb,),
        in_specs=[pl.BlockSpec((tb, F_in), _BATCHED)],
        out_specs=pl.BlockSpec((tb, 1), _BATCHED),
        compiler_params=_compiler_params(),
    )(x_p)
    return ctx[:B]


# ---------------------------------------------------------------------------
# Faithful kernel: executes the module's arithmetic verbatim (for fidelity /
# profiling).  Output is identical to attention_forward.
# ---------------------------------------------------------------------------
def _attention_full_kernel(x_ref, h_ref, wqt_ref, wkt_ref, b_ref, v_ref,
                           bv_ref, ctx_ref):
    x = x_ref[...]                                            # (tb, F)
    h = h_ref[...]                                            # (tb, H)

    # Weights are pre-transposed to (in, out) in the wrapper -> standard MXU
    # contraction, no in-kernel layout shuffle repeated every grid step.
    # bq + bk were fused into a single bias in the wrapper.
    pre = (jnp.dot(h, wqt_ref[...], preferred_element_type=jnp.float32)
           + jnp.dot(x, wkt_ref[...], preferred_element_type=jnp.float32)
           + b_ref[...])                                      # (tb, H)
    act = jnp.tanh(pre)                                       # EUP

    # V projection: VPU multiply + XLU lane reduce (no degenerate N=1 matmul).
    energy = jnp.sum(act * v_ref[...], axis=-1, keepdims=True) + bv_ref[...]

    # softmax over the size-1 axis, exactly as written in the module (== 1.0);
    # normalization via pl.reciprocal keeps the divide off the VPU path.
    m = jnp.max(energy, axis=1, keepdims=True)
    e = jnp.exp(energy - m)
    w = e * pl.reciprocal(jnp.sum(e, axis=1, keepdims=True), approx=False)

    ctx = jnp.sum(x.astype(jnp.float32) * w, axis=1, keepdims=True)
    ctx_ref[...] = ctx.astype(ctx_ref.dtype)


def attention_forward_faithful(x_t, h_prev, Wq, bq, Wk, bk, V, bv):
    """Same output; keeps the module's projection arithmetic in the kernel."""
    B, F_in = x_t.shape
    H = h_prev.shape[1]
    elem_bytes = jnp.dtype(x_t.dtype).itemsize
    tb = _pick_batch_tile(B, (F_in + H) * elem_bytes)
    padded_B = -(-B // tb) * tb
    x_p = _pad_batch(x_t, padded_B)
    h_p = _pad_batch(h_prev, padded_B)

    # One-time weight prep in the wrapper (negligible next to streaming
    # B x (F+H) activations): transpose to (in, out), fuse the two biases.
    wq_t = Wq.T                                   # (H, H)
    wk_t = Wk.T                                   # (F, H)
    b = (bq + bk).reshape(1, H)
    v_row = V.reshape(1, H)
    bv_s = bv.reshape(1, 1)

    # NOTE(v7x): the parameter blocks below are loop-invariant; when H/F are
    # large, pipeline_mode=pl.Buffered(1) on them halves their VMEM footprint.
    ctx = pl.pallas_call(
        _attention_full_kernel,
        out_shape=jax.ShapeDtypeStruct((padded_B, 1), jnp.float32),
        grid=(padded_B // tb,),
        in_specs=[
            pl.BlockSpec((tb, F_in), _BATCHED),   # x_t
            pl.BlockSpec((tb, H), _BATCHED),      # h_prev
            pl.BlockSpec((H, H), _FULL),          # Wq^T
            pl.BlockSpec((F_in, H), _FULL),       # Wk^T
            pl.BlockSpec((1, H), _FULL),          # bq + bk
            pl.BlockSpec((1, H), _FULL),          # V
            pl.BlockSpec((1, 1), _FULL),          # b_V
        ],
        out_specs=pl.BlockSpec((tb, 1), _BATCHED),
        compiler_params=_compiler_params(),
    )(x_p, h_p, wq_t, wk_t, b, v_row, bv_s)
    return ctx[:B]


# ---------------------------------------------------------------------------
# Plain-JAX reference (mirrors the PyTorch forward, full math)
# ---------------------------------------------------------------------------
def reference_forward(x_t, h_prev, Wq, bq, Wk, bk, V, bv):
    query = h_prev @ Wq.T + bq
    keys = x_t @ Wk.T + bk
    energy = jnp.tanh(query + keys) @ V.T + bv            # (B, 1)
    w = jax.nn.softmax(energy, axis=1)                     # (B, 1), == 1.0
    return jnp.sum(x_t * w, axis=1)[:, None]               # (B, 1)


if __name__ == "__main__":
    B, F_in, H = 2, 16, 32
    keys = jax.random.split(jax.random.PRNGKey(0), 10)

    x_t = jax.random.normal(keys[0], (B, F_in), dtype=jnp.float32)
    h_prev = jax.random.normal(keys[1], (B, H), dtype=jnp.float32)

    # Deterministic synthetic parameters in PyTorch nn.Linear layout (out, in).
    sq = 1.0 / jnp.sqrt(jnp.float32(H))
    sk = 1.0 / jnp.sqrt(jnp.float32(F_in))
    Wq = jax.random.normal(keys[2], (H, H), dtype=jnp.float32) * sq
    bq = jax.random.normal(keys[3], (H,), dtype=jnp.float32) * sq
    Wk = jax.random.normal(keys[4], (H, F_in), dtype=jnp.float32) * sk
    bk = jax.random.normal(keys[5], (H,), dtype=jnp.float32) * sk
    V = jax.random.normal(keys[6], (1, H), dtype=jnp.float32) * sq
    bv = jax.random.normal(keys[7], (1,), dtype=jnp.float32) * sq

    ctx_ref = reference_forward(x_t, h_prev, Wq, bq, Wk, bk, V, bv)
    ctx_fast = jax.block_until_ready(
        attention_forward(x_t, h_prev, Wq, bq, Wk, bk, V, bv))
    ctx_full = jax.block_until_ready(
        attention_forward_faithful(x_t, h_prev, Wq, bq, Wk, bk, V, bv))

    assert ctx_fast.shape == (B, 1) and ctx_full.shape == (B, 1)
    assert jnp.allclose(ctx_fast, ctx_ref, atol=1e-5, rtol=1e-5)
    assert jnp.allclose(ctx_full, ctx_ref, atol=1e-5, rtol=1e-5)

    # Ragged, larger batch: exercises wrapper-side padding and a multi-step
    # "parallel" grid (the pipelined / v7x-megacore path).
    B2 = 300
    x2 = jax.random.normal(keys[8], (B2, F_in), dtype=jnp.float32)
    h2 = jax.random.normal(keys[9], (B2, H), dtype=jnp.float32)
    ctx2_ref = reference_forward(x2, h2, Wq, bq, Wk, bk, V, bv)
    ctx2_fast = jax.block_until_ready(
        attention_forward(x2, h2, Wq, bq, Wk, bk, V, bv))
    ctx2_full = jax.block_until_ready(
        attention_forward_faithful(x2, h2, Wq, bq, Wk, bk, V, bv))
    assert ctx2_fast.shape == (B2, 1) and ctx2_full.shape == (B2, 1)
    assert jnp.allclose(ctx2_fast, ctx2_ref, atol=1e-5, rtol=1e-5)
    assert jnp.allclose(ctx2_full, ctx2_ref, atol=1e-5, rtol=1e-5)

    print("KERNEL_OK")
</pallas_src>

<mosaic_0001>
module attributes {stable_mosaic.version = 11 : i64} {
  func.func @_context_rowsum_kernel(%arg0: i32, %arg1: memref<8x16xf32, #tpu.memory_space<vmem>>, %arg2: memref<8x1xf32, #tpu.memory_space<vmem>>) attributes {dimension_semantics = [#tpu.dimension_semantics<parallel>], iteration_bounds = array<i64: 1>, scalar_prefetch = 0 : i64, scratch_operands = 0 : i64, tpu.core_type = #tpu.core_type<tc>, window_params = [{transform_indices = @transform_0, window_bounds = array<i64: 8, 16>}, {transform_indices = @transform_1, window_bounds = array<i64: 8, 1>}]} {
    %c0 = arith.constant 0 : index
    %c0_0 = arith.constant 0 : index
    %0 = vector.load %arg1[%c0, %c0_0] : memref<8x16xf32, #tpu.memory_space<vmem>>, vector<8x16xf32>
    %cst = arith.constant dense<0.000000e+00> : vector<8xf32>
    %1 = vector.multi_reduction <add>, %0, %cst [1] : vector<8x16xf32> to vector<8xf32>
    %2 = vector.shape_cast %1 : vector<8xf32> to vector<8x1xf32>
    %c0_1 = arith.constant 0 : index
    %c0_2 = arith.constant 0 : index
    %3 = vector.load %arg2[%c0_1, %c0_2] : memref<8x1xf32, #tpu.memory_space<vmem>>, vector<8x1xf32>
    tpu.vector_store %arg2[%c0_1, %c0_2], %2 {strides = array<i32>} : memref<8x1xf32, #tpu.memory_space<vmem>>, vector<8x1xf32>,
    return
  }
  func.func @transform_0(%arg0: i32) -> (i32, i32) {
    %c0_i32 = arith.constant 0 : i32
    %c0_i32_0 = arith.constant 0 : i32
    return %arg0, %c0_i32 : i32, i32
  }
  func.func @transform_1(%arg0: i32) -> (i32, i32) {
    %c0_i32 = arith.constant 0 : i32
    %c0_i32_0 = arith.constant 0 : i32
    return %arg0, %c0_i32 : i32, i32
  }
}

</mosaic_0001>

<bundles_post_ra>
// kernel: tpu_custom_call.1
= control target key start
LH: loop header
LB: loop body
LE: loop exit
PB: predicated region body
PF: predicated region fallthrough
CT: control target
= control target key end

     0   :  { %6 = vsyncpa [#allocation3], 0  ;;  %s61_s9 = smov [#allocation2]   ;;  %s78_s0 = inlined_call_operand.hbm [shape: f32[8,16], index: 0, kind: input, shape index: {}]   ;;  %s79_s1 = inlined_call_operand.vmem [shape: f32[8,1], index: 1, kind: output, shape index: {}]  }
   0x1   :  { %s12_s8 = sshll.u32 %s78_s0, 4  ;;  %s14_s10 = sshll.u32 %s61_s9, 4  ;;  %s13_s8 = int_to_ptr.hbm [resolvable:$true] %s12_s8  ;;  %s15_s10 = int_to_ptr.vmem [resolvable:$true] %s14_s10 }
   0x2   :  { %17 = dma.hbm_to_vmem [thread:$0]  %s13_s8, 128, %s15_s10, [#allocation3]  }
   0x3   :  { %59 = dma.done.wait [#allocation3], 128  }
   0x4   :  { %60 = vsyncadd [#allocation3], 4294967168  ;;  %vm23_vm0 = vcmask 130048   ;;  %v22_v0 = vld [vmem:[#allocation2] sm:$0xff]  ;;  %vm27_vm1 = vcmask 7168  }
   0x5   :  { %v24_v1 = vsel %vm23_vm0, %v22_v0, 0.0 }
   0x6   :  { %25 = vadd.xlane.f32.xlu0 %v24_v1 }
  0x79   :  { %v26_v2 = vpop.xlane.xlu0 %25 }
  0x7a   :  { %28 = vst.msk [vmem:[%s79_s1] sm:$0xff] %vm27_vm1, %v26_v2 }
  0x7b   :  { %33 = vsyncpa [#allocation3], 1 }

</bundles_post_ra>
